<compile_context>
chip_gen: v5e
topology: v5e:2x2
jax: 0.10.0
libtpu: 0.0.40
codegen_flags: <defaults>
</compile_context>

<pallas_src>
import functools

import jax
import jax.numpy as jnp
from jax.experimental import pallas as pl
from jax.experimental.pallas import tpu as pltpu


def _static_pow(base, exponent):
    """base ** exponent for a static Python exponent.

    Small integer exponents become a handful of VPU multiplies instead of the
    exp(gamma*log(base)) EUP path that jnp.power with a tensor exponent takes.
    (Non-integer gammas fall back to jnp.power — correct, but a perf cliff.)
    """
    exponent = float(exponent)
    if exponent == 1.0:
        return base
    if exponent.is_integer() and 2.0 <= exponent <= 16.0:
        e = int(exponent)
        result = None
        acc = base
        while e:
            if e & 1:
                result = acc if result is None else result * acc
            e >>= 1
            if e:
                acc = acc * acc
        return result
    return jnp.power(base, exponent)


def _asl_kernel(logits_ref, target_ref, out_ref, acc_ref, *,
                gamma_pos, gamma_neg, eps, n_true_rows, mask_rows):
    """One (tile_n, C) tile of rows; accumulate per-row loss into acc_ref."""
    p = pl.program_id(0)            # TensorCore shard ("parallel")
    i = pl.program_id(1)            # row-tile within shard ("arbitrary")
    n_tiles = pl.num_programs(1)

    @pl.when(i == 0)
    def _():
        acc_ref[...] = jnp.zeros_like(acc_ref)

    x = logits_ref[...].astype(jnp.float32)          # (TN, C) f32 math on all gens
    tgt = target_ref[...]                            # (TN, 1) int32
    tn, c = x.shape

    # --- stable log-softmax; exp evaluated exactly once per element ----------
    m = jnp.max(x, axis=-1, keepdims=True)
    z = x - m
    e = jnp.exp(z)
    s = jnp.sum(e, axis=-1, keepdims=True)
    log_preds = z - jnp.log(s)                       # log-softmax

    # --- one-hot membership via lane-iota compare (scatter_ equivalent) ------
    # Grid-invariant and ~1 VPU op; relied on the compiler to hoist/cheapen it.
    col = jax.lax.broadcasted_iota(jnp.int32, (tn, c), 1)
    is_target = col == tgt

    # --- fused label-smoothing + asymmetric-focusing coefficient -------------
    #   loss_elem = coeff * log_preds
    #   target lanes : -(1 - eps + eps/C) * (1 - p)^gamma_pos
    #   other  lanes : -(eps/C)           * p^gamma_neg
    c_pos = -(1.0 - eps + eps / c)
    c_neg = -(eps / c)
    if gamma_pos != 0.0 or gamma_neg != 0.0:
        # probs == exp(log_preds); reuse e, divide via approx reciprocal (EUP).
        probs = e * pl.reciprocal(s, approx=True)
    pos_branch = c_pos if gamma_pos == 0.0 else c_pos * _static_pow(1.0 - probs, gamma_pos)
    neg_branch = c_neg if gamma_neg == 0.0 else c_neg * _static_pow(probs, gamma_neg)
    coeff = jnp.where(is_target, pos_branch, neg_branch)

    loss_rows = jnp.sum(coeff * log_preds, axis=-1, keepdims=True)   # (TN, 1)

    if mask_rows:
        # Rows past the true batch (ragged last block) carry unspecified data;
        # all reductions above are per-row, so zeroing here is sufficient.
        row0 = (p * n_tiles + i) * tn
        row_idx = row0 + jax.lax.broadcasted_iota(jnp.int32, (tn, 1), 0)
        loss_rows = jnp.where(row_idx < n_true_rows, loss_rows, 0.0)

    acc_ref[...] += loss_rows        # plain (TN,1) VPU add every tile

    @pl.when(i == n_tiles - 1)
    def _():
        # Single cross-sublane XLU reduce + output write per shard.
        out_ref[...] = jnp.sum(acc_ref[...]).reshape(1, 1, 1)


def _default_num_shards():
    """2 where one Pallas kernel spans 2 TensorCores (v4/v5p megacore, v7x)."""
    try:
        kind = jax.devices()[0].device_kind.lower()
    except Exception:
        return 1
    return 2 if any(t in kind for t in ("v4", "v5p", "v7")) else 1


def asl_single_label(logits, target, *, gamma_pos=0.0, gamma_neg=4.0,
                     eps=0.1, reduction='mean', tile_n=None, num_shards=None):
    """Pallas implementation of ASLSingleLabel.forward ('mean'/'sum' reduction)."""
    if reduction not in ('mean', 'sum'):
        # TODO(synk): reduction='none' (per-sample loss vector) is not implemented.
        raise NotImplementedError(f"reduction={reduction!r}")

    n, c = logits.shape
    # Note: on HBM-bound chips (v5e/v6e) pass bf16 logits from the producer —
    # the kernel upcasts to f32 internally, halving the dominant HBM read.
    # TODO(synk): for large C not a multiple of 128, pad classes to 128 lanes
    # (large-negative fill + lane mask on the eps/C term) for lane-dense vregs.

    if num_shards is None:
        num_shards = _default_num_shards()

    if tile_n is None:
        # Element-count based tile cap: ~2 MiB per (tile_n, C) f32 block.
        # With ~12 live block-sized tensors (2x double-buffered input + f32
        # temporaries) the working set stays well under v7x's 64 MiB VMEM.
        target_block_bytes = 2 * 1024 * 1024
        tile_n = target_block_bytes // max(c * 4, 1)
        tile_n = int(min(8192, tile_n))
    tile_n = max(8, (int(tile_n) // 8) * 8)
    tile_n = min(tile_n, ((n + 7) // 8) * 8)          # never more rows than the batch

    # No wrapper-side jnp.pad: grid covers ceil(n / tile_n) blocks; the ragged
    # last block is handled by Pallas and garbage rows are masked in-kernel.
    num_blocks = pl.cdiv(n, tile_n)
    num_shards = max(1, min(int(num_shards), num_blocks))
    if num_blocks % num_shards != 0:
        num_shards = 1        # keep every grid block at least partially in-bounds
    tiles_per_shard = num_blocks // num_shards
    mask_rows = (num_blocks * tile_n) != n

    tgt = target.astype(jnp.int32).reshape(n, 1)

    kernel = functools.partial(
        _asl_kernel,
        gamma_pos=float(gamma_pos),
        gamma_neg=float(gamma_neg),
        eps=float(eps),
        n_true_rows=int(n),
        mask_rows=bool(mask_rows),
    )

    row_map = lambda p, i, T=tiles_per_shard: (p * T + i, 0)

    partials = pl.pallas_call(
        kernel,
        out_shape=jax.ShapeDtypeStruct((num_shards, 1, 1), jnp.float32),
        grid_spec=pltpu.PrefetchScalarGridSpec(
            num_scalar_prefetch=0,
            grid=(num_shards, tiles_per_shard),
            in_specs=[
                pl.BlockSpec((tile_n, c), row_map),   # logits row tile
                pl.BlockSpec((tile_n, 1), row_map),   # target row tile
            ],
            out_specs=pl.BlockSpec((1, 1, 1), lambda p, i: (p, 0, 0)),
            scratch_shapes=[pltpu.VMEM((tile_n, 1), jnp.float32)],   # per-shard row accumulator
        ),
        compiler_params=pltpu.CompilerParams(
            dimension_semantics=("parallel", "arbitrary"),
            vmem_limit_bytes=48 * 1024 * 1024,
        ),
    )(logits, tgt)

    total = jnp.sum(partials)
    if reduction == 'mean':
        return total / n
    return total


def _reference(logits, target, gamma_pos=0.0, gamma_neg=4.0, eps=0.1):
    """Pure-JAX reference mirroring the PyTorch forward (reduction='mean')."""
    n, c = logits.shape
    log_preds = jax.nn.log_softmax(logits.astype(jnp.float32), axis=-1)
    targets = jax.nn.one_hot(target, c, dtype=jnp.float32)
    anti = 1.0 - targets
    xs_pos = jnp.exp(log_preds) * targets
    xs_neg = (1.0 - jnp.exp(log_preds)) * anti
    w = jnp.power(1.0 - xs_pos - xs_neg, gamma_pos * targets + gamma_neg * anti)
    lp = log_preds * w
    tc = targets * (1.0 - eps) + eps / c
    loss = jnp.sum(-tc * lp, axis=-1)
    return jnp.mean(loss)


if __name__ == "__main__":
    key = jax.random.PRNGKey(0)
    k1, k2, k3, k4, k5, k6 = jax.random.split(key, 6)

    # Case 1: small aligned batch, module default hyper-params.
    N, C = 8, 32
    logits = jax.random.normal(k1, (N, C), dtype=jnp.float32)
    target = jax.random.randint(k2, (N,), 0, C, dtype=jnp.int32)
    loss = jax.block_until_ready(asl_single_label(logits, target))
    ref = _reference(logits, target)
    assert jnp.allclose(loss, ref, rtol=1e-4, atol=1e-4), (loss, ref)

    # Case 2: ragged batch — exercises the no-pad path + in-kernel row mask.
    N2 = 13
    logits2 = jax.random.normal(k3, (N2, C), dtype=jnp.float32)
    target2 = jax.random.randint(k4, (N2,), 0, C, dtype=jnp.int32)
    loss2 = jax.block_until_ready(asl_single_label(logits2, target2))
    ref2 = _reference(logits2, target2)
    assert jnp.allclose(loss2, ref2, rtol=1e-4, atol=1e-4), (loss2, ref2)

    # Case 3: several row tiles per shard — exercises the accumulator path.
    N3 = 24
    logits3 = jax.random.normal(k5, (N3, C), dtype=jnp.float32)
    target3 = jax.random.randint(k6, (N3,), 0, C, dtype=jnp.int32)
    loss3 = jax.block_until_ready(asl_single_label(logits3, target3, tile_n=8))
    ref3 = _reference(logits3, target3)
    assert jnp.allclose(loss3, ref3, rtol=1e-4, atol=1e-4), (loss3, ref3)

    print("KERNEL_OK")
</pallas_src>

<mosaic_0001>
module attributes {stable_mosaic.version = 11 : i64} {
  func.func @_asl_kernel(%arg0: i32, %arg1: i32, %arg2: memref<8x32xf32, #tpu.memory_space<vmem>>, %arg3: memref<8x1xi32, #tpu.memory_space<vmem>>, %arg4: memref<1x1x1xf32, #tpu.memory_space<vmem>>, %arg5: memref<8x1xf32, #tpu.memory_space<vmem>>) attributes {dimension_semantics = [#tpu.dimension_semantics<parallel>, #tpu.dimension_semantics<arbitrary>], iteration_bounds = array<i64: 1, 1>, scalar_prefetch = 0 : i64, scratch_operands = 1 : i64, tpu.core_type = #tpu.core_type<tc>, window_params = [{transform_indices = @transform_0, window_bounds = array<i64: 8, 32>}, {transform_indices = @transform_1, window_bounds = array<i64: 8, 1>}, {transform_indices = @transform_2, window_bounds = array<i64: 1, 1, 1>}]} {
    %c0_i32 = arith.constant 0 : i32
    %0 = arith.cmpi eq, %arg1, %c0_i32 : i32
    %1 = arith.extui %0 : i1 to i32
    %c0_i32_0 = arith.constant 0 : i32
    %2 = arith.cmpi ne, %1, %c0_i32_0 : i32
    scf.if %2 {
      %cst_14 = arith.constant 0.000000e+00 : f32
      %36 = vector.broadcast %cst_14 : f32 to vector<8x1xf32>
      %c0_15 = arith.constant 0 : index
      %c0_16 = arith.constant 0 : index
      %37 = vector.load %arg5[%c0_15, %c0_16] : memref<8x1xf32, #tpu.memory_space<vmem>>, vector<8x1xf32>
      tpu.vector_store %arg5[%c0_15, %c0_16], %36 {strides = array<i32>} : memref<8x1xf32, #tpu.memory_space<vmem>>, vector<8x1xf32>,
    } else {
    }
    %c0 = arith.constant 0 : index
    %c0_1 = arith.constant 0 : index
    %3 = vector.load %arg2[%c0, %c0_1] : memref<8x32xf32, #tpu.memory_space<vmem>>, vector<8x32xf32>
    %c0_2 = arith.constant 0 : index
    %c0_3 = arith.constant 0 : index
    %4 = vector.load %arg3[%c0_2, %c0_3] : memref<8x1xi32, #tpu.memory_space<vmem>>, vector<8x1xi32>
    %cst = arith.constant dense<0xFF800000> : vector<8xf32>
    %5 = vector.multi_reduction <maximumf>, %3, %cst [1] : vector<8x32xf32> to vector<8xf32>
    %6 = vector.shape_cast %5 : vector<8xf32> to vector<8x1xf32>
    %7 = vector.broadcast %6 : vector<8x1xf32> to vector<8x32xf32>
    %8 = arith.subf %3, %7 : vector<8x32xf32>
    %9 = math.exp %8 : vector<8x32xf32>
    %cst_4 = arith.constant dense<0.000000e+00> : vector<8xf32>
    %10 = vector.multi_reduction <add>, %9, %cst_4 [1] : vector<8x32xf32> to vector<8xf32>
    %11 = vector.shape_cast %10 : vector<8xf32> to vector<8x1xf32>
    %12 = math.log %11 : vector<8x1xf32>
    %13 = vector.broadcast %12 : vector<8x1xf32> to vector<8x32xf32>
    %14 = arith.subf %8, %13 : vector<8x32xf32>
    %15 = tpu.iota {dimensions = array<i32: 1>} : vector<8x32xi32>
    %16 = vector.broadcast %4 : vector<8x1xi32> to vector<8x32xi32>
    %17 = arith.cmpi eq, %15, %16 : vector<8x32xi32>
    %18 = tpu.reciprocal %11 {approx = true} : vector<8x1xf32> -> vector<8x1xf32>
    %19 = vector.broadcast %18 : vector<8x1xf32> to vector<8x32xf32>
    %20 = arith.mulf %9, %19 : vector<8x32xf32>
    %21 = arith.mulf %20, %20 : vector<8x32xf32>
    %22 = arith.mulf %21, %21 : vector<8x32xf32>
    %cst_5 = arith.constant -3.125000e-03 : f32
    %23 = vector.broadcast %cst_5 : f32 to vector<8x32xf32>
    %24 = arith.mulf %23, %22 : vector<8x32xf32>
    %cst_6 = arith.constant -0.903124988 : f32
    %25 = vector.broadcast %cst_6 : f32 to vector<8x32xf32>
    %26 = arith.select %17, %25, %24 : vector<8x32xi1>, vector<8x32xf32>
    %27 = arith.mulf %26, %14 : vector<8x32xf32>
    %cst_7 = arith.constant dense<0.000000e+00> : vector<8xf32>
    %28 = vector.multi_reduction <add>, %27, %cst_7 [1] : vector<8x32xf32> to vector<8xf32>
    %29 = vector.shape_cast %28 : vector<8xf32> to vector<8x1xf32>
    %c0_8 = arith.constant 0 : index
    %c0_9 = arith.constant 0 : index
    %30 = vector.load %arg5[%c0_8, %c0_9] : memref<8x1xf32, #tpu.memory_space<vmem>>, vector<8x1xf32>
    %31 = arith.addf %30, %29 : vector<8x1xf32>
    %c0_10 = arith.constant 0 : index
    %c0_11 = arith.constant 0 : index
    %32 = vector.load %arg5[%c0_10, %c0_11] : memref<8x1xf32, #tpu.memory_space<vmem>>, vector<8x1xf32>
    tpu.vector_store %arg5[%c0_10, %c0_11], %31 {strides = array<i32>} : memref<8x1xf32, #tpu.memory_space<vmem>>, vector<8x1xf32>,
    %c0_i32_12 = arith.constant 0 : i32
    %33 = arith.cmpi eq, %arg1, %c0_i32_12 : i32
    %34 = arith.extui %33 : i1 to i32
    %c0_i32_13 = arith.constant 0 : i32
    %35 = arith.cmpi ne, %34, %c0_i32_13 : i32
    scf.if %35 {
      %c0_14 = arith.constant 0 : index
      %c0_15 = arith.constant 0 : index
      %36 = vector.load %arg5[%c0_14, %c0_15] : memref<8x1xf32, #tpu.memory_space<vmem>>, vector<8x1xf32>
      %37 = vector.shape_cast %36 : vector<8x1xf32> to vector<1x8x1xf32>
      %cst_16 = arith.constant dense<0.000000e+00> : vector<1xf32>
      %38 = vector.multi_reduction <add>, %37, %cst_16 [1, 2] : vector<1x8x1xf32> to vector<1xf32>
      %39 = vector.shape_cast %38 : vector<1xf32> to vector<1x1x1xf32>
      %40 = vector.extract %39[0, 0, 0] : f32 from vector<1x1x1xf32>
      %41 = vector.broadcast %40 : f32 to vector<1x1x1xf32>
      %c0_17 = arith.constant 0 : index
      %c0_18 = arith.constant 0 : index
      %c0_19 = arith.constant 0 : index
      %42 = vector.load %arg4[%c0_17, %c0_18, %c0_19] : memref<1x1x1xf32, #tpu.memory_space<vmem>>, vector<1x1x1xf32>
      tpu.vector_store %arg4[%c0_17, %c0_18, %c0_19], %41 {strides = array<i32>} : memref<1x1x1xf32, #tpu.memory_space<vmem>>, vector<1x1x1xf32>,
    } else {
    }
    return
  }
  func.func @transform_0(%arg0: i32, %arg1: i32) -> (i32, i32) {
    %c1_i32 = arith.constant 1 : i32
    %0 = arith.muli %arg0, %c1_i32 : i32
    %1 = arith.addi %0, %arg1 : i32
    %c0_i32 = arith.constant 0 : i32
    %c0_i32_0 = arith.constant 0 : i32
    return %1, %c0_i32 : i32, i32
  }
  func.func @transform_1(%arg0: i32, %arg1: i32) -> (i32, i32) {
    %c1_i32 = arith.constant 1 : i32
    %0 = arith.muli %arg0, %c1_i32 : i32
    %1 = arith.addi %0, %arg1 : i32
    %c0_i32 = arith.constant 0 : i32
    %c0_i32_0 = arith.constant 0 : i32
    return %1, %c0_i32 : i32, i32
  }
  func.func @transform_2(%arg0: i32, %arg1: i32) -> (i32, i32, i32) {
    %c0_i32 = arith.constant 0 : i32
    %c0_i32_0 = arith.constant 0 : i32
    %c0_i32_1 = arith.constant 0 : i32
    return %arg0, %c0_i32, %c0_i32_0 : i32, i32, i32
  }
}

</mosaic_0001>

<bundles_post_ra>
// kernel: tpu_custom_call.1
= control target key start
LH: loop header
LB: loop body
LE: loop exit
PB: predicated region body
PF: predicated region fallthrough
CT: control target
= control target key end

     0   :  { %vm54_vm0 = vcmask 261120   ;;  %s201_s0 = inlined_call_operand.vmem [shape: f32[8,32], index: 0, kind: input, shape index: {}]   ;;  %s202_s1 = inlined_call_operand.vmem [shape: s32[8,1], index: 1, kind: input, shape index: {}]   ;;  %s203_s2 = inlined_call_operand.hbm [shape: f32[1,1,1], index: 2, kind: output, shape index: {}]  }
   0x1   :  { %v52_v0 = vld [vmem:[%s201_s0] sm:$0xff] }
   0x2   :  { %7 = vsyncpa [#allocation4], 0  ;;  %v55_v1 = vsel %vm54_vm0, %v52_v0, -inf  ;;  %v53_v2 = vld [vmem:[%s202_s1] sm:$0xff]  ;;  %v171_v3 = vmov 0   ;;  %v67_v10 = vlaneseq  ;;  %vm50_vm2 = vcmask 7168  }
   0x3   :  { %56 = vmax.xlane.f32.xlu0 %v55_v1  ;;  %137 = vset.pattern.permute.xlu1 %v171_v3  ;;  %v172_v24 = vmov 0.0   ;;  %s173_s0 = smov [#allocation3]   ;;  %s111_s15 = sshll.u32 %s203_s2, 4  ;;  %vm102_vm3 = vcmask 0   ;;  %s112_s15 = int_to_ptr.hbm [resolvable:$true] %s111_s15 }
   0x4   :  { %138 = vset.pattern.permute.xlu0 %v171_v3  ;;  %70 = vperm.xlu1 %137, %v53_v2   ;;  %v68_v14 = vand.u32 127, %v67_v10  ;;  %51 = vst.msk [vmem:[#allocation2] sm:$0xff] %vm50_vm2, %v172_v24  ;;  %s109_s1 = sshll.u32 %s173_s0, 4  ;;  %s110_s1 = int_to_ptr.vmem [resolvable:$true] %s109_s1 }
   0xb   :  { %v83_v25 = vld [vmem:[#allocation2] sm:$0xff] }
  0x76   :  { %v57_v4 = vpop.xlane.xlu0 %56  ;;  %v71_v15 = vpop.permute.xlu1 %70 }
  0x77   :  { %v58_v5 = vsub.f32 %v52_v0, %v57_v4  ;;  %vm72_vm1 = vcmp.eq.s32.totalorder %v68_v14, %v71_v15 }
  0x79   :  { %v59_v6 = vmul.f32 1.442695, %v58_v5 }
  0x7b   :  { %139 = vpow2.f32 %v59_v6 }
  0x81   :  { %v140_v7 = vpop.eup %139 }
  0x82   :  { %v61_v8 = vsel %vm54_vm0, %v140_v7, 0.0 }
  0x83   :  { %62 = vadd.xlane.f32.xlu0 %v61_v8 }
  0xf6   :  { %v63_v9 = vpop.xlane.xlu0 %62 }
  0xf7   :  { %141 = vrcp.f32 %v63_v9 }
  0xf8   :  { %143 = vlog2.f32 %v63_v9 }
  0xfd   :  { %v142_v11 = vpop.eup %141 }
  0xfe   :  { %v144_v12 = vpop.eup %143  ;;  %v74_v13 = vmul.f32 %v142_v11, %v140_v7 }
  0xff   :  { %v65_v17 = vmul.f32 0.6931472, %v144_v12 }
 0x100   :  { %v75_v16 = vmul.f32 %v74_v13, %v74_v13 }
 0x101   :  { %v66_v20 = vsub.f32 %v58_v5, %v65_v17 }
 0x102   :  { %v76_v18 = vmul.f32 %v75_v16, %v75_v16 }
 0x104   :  { %v77_v19 = vmul.f32 -0.003125, %v76_v18 }
 0x106   :  { %v78_v21 = vsel %vm72_vm1, -0.903125, %v77_v19 }
 0x107   :  { %v79_v22 = vmul.f32 %v78_v21, %v66_v20 }
 0x109   :  { %v80_v23 = vsel %vm54_vm0, %v79_v22, 0.0 }
 0x10a   :  { %81 = vadd.xlane.f32.xlu1 %v80_v23 }
 0x17d   :  { %v82_v26 = vpop.xlane.xlu1 %81 }
 0x17e   :  { %v84_v27 = vadd.f32 %v83_v25, %v82_v26 }
 0x180   :  { %86 = vst.msk [vmem:[#allocation2] sm:$0xff] %vm50_vm2, %v84_v27 }
 0x187   :  { %v90_v28 = vld [vmem:[#allocation2] sm:$0xff] }
 0x188   :  { %v91_v29 = vsel %vm50_vm2, %v90_v28, 0.0 }
 0x189   :  { %92 = vadd.xlane.f32.xlu2 %v91_v29 }
 0x1fc   :  { %v93_v30 = vpop.xlane.xlu2 %92 }
 0x1fd   :  { %v94_v31 = vrot.slane %v93_v30, 4 }
 0x1ff   :  { %v95_v32 = vadd.f32 %v94_v31, %v93_v30 }
 0x201   :  { %v96_v33 = vrot.slane %v95_v32, 2 }
 0x203   :  { %v97_v34 = vadd.f32 %v96_v33, %v95_v32 }
 0x205   :  { %v98_v35 = vrot.slane %v97_v34, 1 }
 0x207   :  { %v99_v36 = vadd.f32 %v98_v35, %v97_v34 }
 0x209   :  { %132 = vpush %v99_v36 }
 0x23a   :  { %s133_s16 = spop %132 }
 0x23b   :  { %v101_v37 = vstv %s133_s16 }
 0x23c   :  { %103 = vst.msk [vmem:[#allocation3] sm:$0x1] %vm102_vm3, %v101_v37 }
 0x23d   :  { %114 = dma.vmem_to_hbm [thread:$0]  %s110_s1, 16, %s112_s15, [#allocation4]  }
 0x23e   :  { %169 = dma.done.wait [#allocation4], 16  }
 0x23f   :  { %170 = vsyncadd [#allocation4], 4294967280 }
 0x240   :  { %119 = vsyncpa [#allocation4], 1 }

</bundles_post_ra>
